<compile_context>
chip_gen: v7x
topology: tpu7x:2x2x1
jax: 0.10.0
libtpu: 0.0.40
codegen_flags: <defaults>
</compile_context>

<pallas_src>
import jax
import jax.numpy as jnp
from jax.experimental import pallas as pl
from jax.experimental.pallas import tpu as pltpu


def ffn_kernel(x_ref, w1_ref, b1_ref, w2_ref, b2_ref, out_ref):
    """One row-tile of:  out = x + fc2(relu(x @ W1' + b1'))  (BN already folded)."""
    x = x_ref[...]                                              # (TN, D) f32
    # fc1 (BN folded in) -> ReLU   : bf16 MXU operands, f32 accumulation
    h = jnp.dot(x.astype(jnp.bfloat16), w1_ref[...],
                preferred_element_type=jnp.float32) + b1_ref[...]   # (TN, H)
    h = jnp.maximum(h, 0.0)
    # fc2
    ff = jnp.dot(h.astype(jnp.bfloat16), w2_ref[...],
                 preferred_element_type=jnp.float32) + b2_ref[...]  # (TN, D)
    # residual in f32
    out_ref[...] = (x + ff).astype(out_ref.dtype)


def ffn_layer(x, gamma, beta, w1, b1, w2, b2, *, block_rows=256, eps=1e-3):
    """x: (N, D) feature rows.  gamma/beta: (1, D).  w1: (D, 2D), b1: (1, 2D),
    w2: (2D, D), b2: (1, D)  (linear weights stored as (in, out) == torch weight.T).
    Returns (N, D) = x + fc2(relu(fc1(bn(x))))."""
    N, D = x.shape
    H = w1.shape[1]

    x32 = x.astype(jnp.float32)

    # ---- BatchNorm1d training-mode batch statistics (single-pass, outside kernel) ----
    mean = jnp.mean(x32, axis=0, keepdims=True)                           # (1, D)
    var = jnp.maximum(jnp.mean(jnp.square(x32), axis=0, keepdims=True)
                      - jnp.square(mean), 0.0)                            # biased var
    rstd = jax.lax.rsqrt(var + eps)
    scale = gamma.astype(jnp.float32) * rstd                              # (1, D)
    shift = beta.astype(jnp.float32) - mean * scale                       # (1, D)

    # ---- Fold BN affine into fc1 -------------------------------------------------
    w1_f = scale.reshape(D, 1) * w1.astype(jnp.float32)                   # (D, H)
    b1_f = shift @ w1.astype(jnp.float32) + b1.astype(jnp.float32)        # (1, H)

    # bf16 weights for the MXU (accumulation stays f32 in-kernel).
    w1_bf = w1_f.astype(jnp.bfloat16)
    w2_bf = w2.astype(jnp.bfloat16)
    b2_f = b2.astype(jnp.float32)

    # ---- Row tiling: pad N up to a multiple of the tile --------------------------
    TN = block_rows
    n_tiles = pl.cdiv(N, TN)
    Np = n_tiles * TN
    x_in = x32 if Np == N else jnp.zeros((Np, D), jnp.float32).at[:N].set(x32)

    out = pl.pallas_call(
        ffn_kernel,
        out_shape=jax.ShapeDtypeStruct((Np, D), x.dtype),
        grid_spec=pl.GridSpec(
            grid=(n_tiles,),
            in_specs=[
                pl.BlockSpec((TN, D), lambda i: (i, 0)),   # x: tiled over rows
                pl.BlockSpec((D, H), lambda i: (0, 0)),    # w1': resident
                pl.BlockSpec((1, H), lambda i: (0, 0)),    # b1': resident
                pl.BlockSpec((H, D), lambda i: (0, 0)),    # w2 : resident
                pl.BlockSpec((1, D), lambda i: (0, 0)),    # b2 : resident
            ],
            out_specs=pl.BlockSpec((TN, D), lambda i: (i, 0)),
        ),
        compiler_params=pltpu.CompilerParams(
            dimension_semantics=("parallel",),
        ),
    )(x_in, w1_bf, b1_f, w2_bf, b2_f)

    return out if Np == N else out[:N]


def reference(x, gamma, beta, w1, b1, w2, b2, eps=1e-3):
    x32 = x.astype(jnp.float32)
    mean = jnp.mean(x32, axis=0, keepdims=True)
    var = jnp.mean((x32 - mean) ** 2, axis=0, keepdims=True)
    xb = (x32 - mean) / jnp.sqrt(var + eps) * gamma + beta
    h = jnp.maximum(xb @ w1 + b1, 0.0)
    return (x32 + (h @ w2 + b2)).astype(x.dtype)


if __name__ == "__main__":
    embed_dim = 32
    N = 64  # number of sparse feature rows

    key = jax.random.PRNGKey(0)
    kx, kg, kb, kw1, kb1, kw2, kb2 = jax.random.split(key, 7)

    x = jax.random.normal(kx, (N, embed_dim), dtype=jnp.float32)

    # Deterministic synthetic parameters (not a checkpoint load).
    gamma = 1.0 + 0.1 * jax.random.normal(kg, (1, embed_dim), dtype=jnp.float32)
    beta = 0.1 * jax.random.normal(kb, (1, embed_dim), dtype=jnp.float32)
    w1 = 0.1 * jax.random.normal(kw1, (embed_dim, 2 * embed_dim), dtype=jnp.float32)
    b1 = 0.1 * jax.random.normal(kb1, (1, 2 * embed_dim), dtype=jnp.float32)
    w2 = 0.1 * jax.random.normal(kw2, (2 * embed_dim, embed_dim), dtype=jnp.float32)
    b2 = 0.1 * jax.random.normal(kb2, (1, embed_dim), dtype=jnp.float32)

    out = ffn_layer(x, gamma, beta, w1, b1, w2, b2, block_rows=256)
    out = jax.block_until_ready(out)

    ref = reference(x, gamma, beta, w1, b1, w2, b2)
    assert out.shape == (N, embed_dim)
    # Tolerance loosened for bf16 MXU operands (f32 accumulation + f32 residual).
    assert jnp.allclose(out, ref, atol=2e-2, rtol=2e-2), "mismatch vs reference"

    print("KERNEL_OK")
</pallas_src>

<mosaic_0001>
module attributes {stable_mosaic.version = 11 : i64} {
  func.func @ffn_kernel(%arg0: i32, %arg1: memref<256x32xf32, #tpu.memory_space<vmem>>, %arg2: memref<32x64xbf16, #tpu.memory_space<vmem>>, %arg3: memref<1x64xf32, #tpu.memory_space<vmem>>, %arg4: memref<64x32xbf16, #tpu.memory_space<vmem>>, %arg5: memref<1x32xf32, #tpu.memory_space<vmem>>, %arg6: memref<256x32xf32, #tpu.memory_space<vmem>>) attributes {dimension_semantics = [#tpu.dimension_semantics<parallel>], iteration_bounds = array<i64: 1>, scalar_prefetch = 0 : i64, scratch_operands = 0 : i64, tpu.core_type = #tpu.core_type<tc>, window_params = [{transform_indices = @transform_0, window_bounds = array<i64: 256, 32>}, {pipeline_mode = #tpu.pipeline_mode<synchronous>, transform_indices = @transform_1, window_bounds = array<i64: 32, 64>}, {pipeline_mode = #tpu.pipeline_mode<synchronous>, transform_indices = @transform_2, window_bounds = array<i64: 1, 64>}, {pipeline_mode = #tpu.pipeline_mode<synchronous>, transform_indices = @transform_3, window_bounds = array<i64: 64, 32>}, {pipeline_mode = #tpu.pipeline_mode<synchronous>, transform_indices = @transform_4, window_bounds = array<i64: 1, 32>}, {transform_indices = @transform_5, window_bounds = array<i64: 256, 32>}]} {
    %c0 = arith.constant 0 : index
    %c0_0 = arith.constant 0 : index
    %0 = vector.load %arg1[%c0, %c0_0] : memref<256x32xf32, #tpu.memory_space<vmem>>, vector<256x32xf32>
    %1 = arith.truncf %0 : vector<256x32xf32> to vector<256x32xbf16>
    %c0_1 = arith.constant 0 : index
    %c0_2 = arith.constant 0 : index
    %2 = vector.load %arg2[%c0_1, %c0_2] : memref<32x64xbf16, #tpu.memory_space<vmem>>, vector<32x64xbf16>
    %cst = arith.constant dense<0.000000e+00> : vector<256x64xf32>
    %3 = tpu.matmul %1, %2, %cst {dimension_numbers = #tpu.dot_dimension_numbers<[1], [0], [0], [1], [0, 0, 1, 1], [], []>} : vector<256x32xbf16>, vector<32x64xbf16>, vector<256x64xf32> -> vector<256x64xf32>
    %c0_3 = arith.constant 0 : index
    %c0_4 = arith.constant 0 : index
    %4 = vector.load %arg3[%c0_3, %c0_4] : memref<1x64xf32, #tpu.memory_space<vmem>>, vector<1x64xf32>
    %5 = vector.broadcast %4 : vector<1x64xf32> to vector<256x64xf32>
    %6 = arith.addf %3, %5 : vector<256x64xf32>
    %cst_5 = arith.constant 0.000000e+00 : f32
    %7 = vector.broadcast %cst_5 : f32 to vector<256x64xf32>
    %8 = arith.maximumf %6, %7 : vector<256x64xf32>
    %9 = arith.truncf %8 : vector<256x64xf32> to vector<256x64xbf16>
    %c0_6 = arith.constant 0 : index
    %c0_7 = arith.constant 0 : index
    %10 = vector.load %arg4[%c0_6, %c0_7] : memref<64x32xbf16, #tpu.memory_space<vmem>>, vector<64x32xbf16>
    %cst_8 = arith.constant dense<0.000000e+00> : vector<256x32xf32>
    %11 = tpu.matmul %9, %10, %cst_8 {dimension_numbers = #tpu.dot_dimension_numbers<[1], [0], [0], [1], [0, 0, 1, 1], [], []>} : vector<256x64xbf16>, vector<64x32xbf16>, vector<256x32xf32> -> vector<256x32xf32>
    %c0_9 = arith.constant 0 : index
    %c0_10 = arith.constant 0 : index
    %12 = vector.load %arg5[%c0_9, %c0_10] : memref<1x32xf32, #tpu.memory_space<vmem>>, vector<1x32xf32>
    %13 = vector.broadcast %12 : vector<1x32xf32> to vector<256x32xf32>
    %14 = arith.addf %11, %13 : vector<256x32xf32>
    %15 = arith.addf %0, %14 : vector<256x32xf32>
    %c0_11 = arith.constant 0 : index
    %c0_12 = arith.constant 0 : index
    %16 = vector.load %arg6[%c0_11, %c0_12] : memref<256x32xf32, #tpu.memory_space<vmem>>, vector<256x32xf32>
    tpu.vector_store %arg6[%c0_11, %c0_12], %15 {strides = array<i32>} : memref<256x32xf32, #tpu.memory_space<vmem>>, vector<256x32xf32>,
    return
  }
  func.func @transform_0(%arg0: i32) -> (i32, i32) {
    %c0_i32 = arith.constant 0 : i32
    %c0_i32_0 = arith.constant 0 : i32
    return %arg0, %c0_i32 : i32, i32
  }
  func.func @transform_1(%arg0: i32) -> (i32, i32) {
    %c0_i32 = arith.constant 0 : i32
    %c0_i32_0 = arith.constant 0 : i32
    %c0_i32_1 = arith.constant 0 : i32
    return %c0_i32, %c0_i32_0 : i32, i32
  }
  func.func @transform_2(%arg0: i32) -> (i32, i32) {
    %c0_i32 = arith.constant 0 : i32
    %c0_i32_0 = arith.constant 0 : i32
    %c0_i32_1 = arith.constant 0 : i32
    return %c0_i32, %c0_i32_0 : i32, i32
  }
  func.func @transform_3(%arg0: i32) -> (i32, i32) {
    %c0_i32 = arith.constant 0 : i32
    %c0_i32_0 = arith.constant 0 : i32
    %c0_i32_1 = arith.constant 0 : i32
    return %c0_i32, %c0_i32_0 : i32, i32
  }
  func.func @transform_4(%arg0: i32) -> (i32, i32) {
    %c0_i32 = arith.constant 0 : i32
    %c0_i32_0 = arith.constant 0 : i32
    %c0_i32_1 = arith.constant 0 : i32
    return %c0_i32, %c0_i32_0 : i32, i32
  }
  func.func @transform_5(%arg0: i32) -> (i32, i32) {
    %c0_i32 = arith.constant 0 : i32
    %c0_i32_0 = arith.constant 0 : i32
    return %arg0, %c0_i32 : i32, i32
  }
}

</mosaic_0001>

<bundles_post_ra>
// kernel: tpu_custom_call.1
= control target key start
LH: loop header
LB: loop body
LE: loop exit
PB: predicated region body
PF: predicated region fallthrough
CT: control target
= control target key end

     0   :  { %vm92_vm0 = vcmask 261120   ;;  %vm389_vm1 = vcmask 523264   ;;  %s1333_s1 = inlined_call_operand.vmem [shape: bf16[32,64], index: 1, kind: input, shape index: {}]   ;;  %s1334_s0 = inlined_call_operand.vmem [shape: f32[256,32], index: 0, kind: input, shape index: {}]   ;;  %s1335_s3 = inlined_call_operand.vmem [shape: bf16[64,32], index: 3, kind: input, shape index: {}]   ;;  %s1336_s2 = inlined_call_operand.vmem [shape: f32[1,64], index: 2, kind: input, shape index: {}]   ;;  %s1337_s4 = inlined_call_operand.vmem [shape: f32[1,32], index: 4, kind: input, shape index: {}]   ;;  %s1338_s5 = inlined_call_operand.vmem [shape: f32[256,32], index: 5, kind: output, shape index: {}]  }
   0x1   :  { %v821_v0 = vld [vmem:[%s1333_s1] sm:$0xff]   ;;  %v822_v1 = vld [vmem:[%s1333_s1 + $0x8] sm:$0xff]   ;;  %v878_v5 = vld [vmem:[%s1334_s0 + $0x10] sm:$0xff] }
   0x2   :  { %745 = vmatprep.subr.bf16.mxu0 %v821_v0  ;;  %v866_v2 = vld [vmem:[%s1334_s0] sm:$0xff]  ;;  %v871_v3 = vld [vmem:[%s1334_s0 + $0x8] sm:$0xff]  ;;  %v883_v6 = vld [vmem:[%s1334_s0 + $0x18] sm:$0xff] }
   0x3   :  { %746 = vmatpush3.bf16.msra.mxu0 %v821_v0  ;;  %v53_v4 = vpack.c.bf16 %v871_v3, %v866_v2  ;;  %v888_v7 = vld [vmem:[%s1334_s0 + $0x20] sm:$0xff]  ;;  %v893_v8 = vld [vmem:[%s1334_s0 + $0x28] sm:$0xff]  ;;  %v54_v9 = vpack.c.bf16 %v883_v6, %v878_v5  ;;  %v905_v11 = vld [vmem:[%s1334_s0 + $0x30] sm:$0xff] }
   0x4   :  { %747 = vmatprep.subr.bf16.mxu0 %v822_v1  ;;  %v55_v10 = vpack.c.bf16 %v893_v8, %v888_v7  ;;  %v910_v12 = vld [vmem:[%s1334_s0 + $0x38] sm:$0xff]  ;;  %v915_v13 = vld [vmem:[%s1334_s0 + $0x40] sm:$0xff]  ;;  %v920_v14 = vld [vmem:[%s1334_s0 + $0x48] sm:$0xff] }
   0x5   :  { %749 = vmatprep.mubr.msk.bf16.mxu0 %vm92_vm0, %v53_v4  ;;  %v823_v15 = vld [vmem:[%s1335_s3] sm:$0xff]   ;;  %v56_v16 = vpack.c.bf16 %v910_v12, %v905_v11  ;;  %v824_v17 = vld [vmem:[%s1335_s3 + $0x8] sm:$0xff]   ;;  %v57_v18 = vpack.c.bf16 %v920_v14, %v915_v13  ;;  %v937_v19 = vld [vmem:[%s1334_s0 + $0x50] sm:$0xff] }
   0x6   :  { %781 = vmatprep.subr.bf16.mxu1 %v823_v15  ;;  %v942_v20 = vld [vmem:[%s1334_s0 + $0x58] sm:$0xff]  ;;  %v947_v21 = vld [vmem:[%s1334_s0 + $0x60] sm:$0xff]  ;;  %v952_v22 = vld [vmem:[%s1334_s0 + $0x68] sm:$0xff] }
   0x7   :  { %748 = vmatpush3.bf16.msra.mxu0 %v822_v1  ;;  %782 = vmatpush3.bf16.msra.mxu1 %v823_v15  ;;  %v58_v23 = vpack.c.bf16 %v942_v20, %v937_v19  ;;  %v59_v24 = vpack.c.bf16 %v952_v22, %v947_v21  ;;  %v963_v25 = vld [vmem:[%s1334_s0 + $0x70] sm:$0xff]  ;;  %v968_v26 = vld [vmem:[%s1334_s0 + $0x78] sm:$0xff]  ;;  %v973_v27 = vld [vmem:[%s1334_s0 + $0x80] sm:$0xff] }
   0x8   :  { %783 = vmatprep.subr.bf16.mxu1 %v824_v17  ;;  %v978_v28 = vld [vmem:[%s1334_s0 + $0x88] sm:$0xff]  ;;  %v60_v29 = vpack.c.bf16 %v968_v26, %v963_v25  ;;  %v989_v31 = vld [vmem:[%s1334_s0 + $0x90] sm:$0xff]  ;;  %v994_v32 = vld [vmem:[%s1334_s0 + $0x98] sm:$0xff] }
   0x9   :  { %v61_v30 = vpack.c.bf16 %v978_v28, %v973_v27  ;;  %v999_v33 = vld [vmem:[%s1334_s0 + $0xa0] sm:$0xff]  ;;  %v1004_v34 = vld [vmem:[%s1334_s0 + $0xa8] sm:$0xff]  ;;  %v62_v35 = vpack.c.bf16 %v994_v32, %v989_v31  ;;  %v1015_v37 = vld [vmem:[%s1334_s0 + $0xb0] sm:$0xff] }
   0xa   :  { %750 = vmatmul.mubr.msk.bf16.vlgmr.msra.gmra.mrb[0].mxu0 %vm92_vm0, %v54_v9  ;;  %v63_v36 = vpack.c.bf16 %v1004_v34, %v999_v33  ;;  %v1020_v38 = vld [vmem:[%s1334_s0 + $0xb8] sm:$0xff]  ;;  %v1025_v39 = vld [vmem:[%s1334_s0 + $0xc0] sm:$0xff]  ;;  %v1030_v40 = vld [vmem:[%s1334_s0 + $0xc8] sm:$0xff] }
   0xb   :  { %753 = vmatprep.mubr.msk.bf16.mxu0 %vm92_vm0, %v55_v10  ;;  %784 = vmatpush3.bf16.msra.mxu1 %v824_v17  ;;  %v64_v41 = vpack.c.bf16 %v1020_v38, %v1015_v37  ;;  %v65_v42 = vpack.c.bf16 %v1030_v40, %v1025_v39  ;;  %v1041_v43 = vld [vmem:[%s1334_s0 + $0xd0] sm:$0xff]  ;;  %v1046_v44 = vld [vmem:[%s1334_s0 + $0xd8] sm:$0xff]  ;;  %v1051_v45 = vld [vmem:[%s1334_s0 + $0xe0] sm:$0xff] }
   0xc   :  { %v1056_v46 = vld [vmem:[%s1334_s0 + $0xe8] sm:$0xff]  ;;  %v66_v47 = vpack.c.bf16 %v1046_v44, %v1041_v43  ;;  %v1067_v49 = vld [vmem:[%s1334_s0 + $0xf0] sm:$0xff]  ;;  %v1072_v50 = vld [vmem:[%s1334_s0 + $0xf8] sm:$0xff] }
   0xd   :  { %v67_v48 = vpack.c.bf16 %v1056_v46, %v1051_v45  ;;  %v68_v51 = vpack.c.bf16 %v1072_v50, %v1067_v49  ;;  %v825_v52 = vld [vmem:[%s1335_s3 + $0x10] sm:$0xff]   ;;  %v826_v53 = vld [vmem:[%s1335_s3 + $0x18] sm:$0xff]   ;;  %v1086_v54 = vld [vmem:[%s1336_s2] ss:$0 sm:$0xff] }
   0xe   :  { %785 = vmatprep.subr.bf16.mxu1 %v825_v52 }
   0xf   :  { %786 = vmatpush3.bf16.msra.mxu1 %v825_v52 }
  0x10   :  { %787 = vmatprep.subr.bf16.mxu1 %v826_v53 }
  0x12   :  { %754 = vmatmul.mubr.msk.bf16.gmra.mrb[4].mxu0 %vm92_vm0, %v56_v16 }
  0x13   :  { %757 = vmatprep.mubr.msk.bf16.mxu0 %vm92_vm0, %v57_v18  ;;  %788 = vmatpush3.bf16.msra.mxu1 %v826_v53 }
  0x1a   :  { %758 = vmatmul.mubr.msk.bf16.gmra.mrb[8].mxu0 %vm92_vm0, %v58_v23 }
  0x1b   :  { %761 = vmatprep.mubr.msk.bf16.mxu0 %vm92_vm0, %v59_v24 }
  0x22   :  { %762 = vmatmul.mubr.msk.bf16.gmra.mrb[12].mxu0 %vm92_vm0, %v60_v29 }
  0x23   :  { %765 = vmatprep.mubr.msk.bf16.mxu0 %vm92_vm0, %v61_v30 }
  0x2a   :  { %766 = vmatmul.mubr.msk.bf16.gmra.mrb[16].mxu0 %vm92_vm0, %v62_v35 }
  0x2b   :  { %769 = vmatprep.mubr.msk.bf16.mxu0 %vm92_vm0, %v63_v36 }
  0x32   :  { %770 = vmatmul.mubr.msk.bf16.gmra.mrb[20].mxu0 %vm92_vm0, %v64_v41 }
  0x33   :  { %773 = vmatprep.mubr.msk.bf16.mxu0 %vm92_vm0, %v65_v42 }
  0x3a   :  { %774 = vmatmul.mubr.msk.bf16.gmra.mrb[24].mxu0 %vm92_vm0, %v66_v47 }
  0x3b   :  { %777 = vmatprep.mubr.msk.bf16.mxu0 %vm92_vm0, %v67_v48 }
  0x42   :  { %778 = vmatmul.mubr.msk.bf16.gmra.mrb[28].mxu0 %vm92_vm0, %v68_v51 }
  0xdd   :  { %v751_v55 = vpop.f32.mrb[0].mxu0 }
  0xde   :  { %v184_v56 = vadd.f32 %v751_v55, %v1086_v54  ;;  %v175_v57 = vpop.f32.mrb[1].mxu0 }
  0xdf   :  { %v176_v58 = vadd.f32 %v1086_v54, %v175_v57  ;;  %v752_v59 = vpop.f32.mrb[2].mxu0 }
  0xe0   :  { %v187_v60 = vadd.f32 %v752_v59, %v1086_v54  ;;  %v178_v61 = vpop.f32.mrb[3].mxu0  ;;  %v304_v63 = vmax.f32 %v184_v56, 0.0 }
  0xe1   :  { %v179_v62 = vadd.f32 %v1086_v54, %v178_v61  ;;  %v302_v1 = vmax.f32 %v176_v58, 0.0 }
  0xe2   :  { %v305_v0 = vmax.f32 %v187_v60, 0.0 }
  0xe3   :  { %v303_v4 = vmax.f32 %v179_v62, 0.0 }
  0xe4   :  { %v335_v9 = vpack.c.bf16 %v305_v0, %v304_v63 }
  0xe5   :  { %v755_v10 = vpop.f32.mrb[4].mxu0  ;;  %v334_v15 = vpack.c.bf16 %v303_v4, %v302_v1 }
  0xe6   :  { %v200_v16 = vadd.f32 %v755_v10, %v1086_v54  ;;  %v191_v17 = vpop.f32.mrb[5].mxu0 }
  0xe7   :  { %v192_v18 = vadd.f32 %v1086_v54, %v191_v17  ;;  %v756_v23 = vpop.f32.mrb[6].mxu0  ;;  %789 = vmatprep.mubr.msk.bf16.mxu1 %vm389_vm1, %v334_v15 }
  0xe8   :  { %v203_v24 = vadd.f32 %v756_v23, %v1086_v54  ;;  %v194_v29 = vpop.f32.mrb[7].mxu0  ;;  %790 = vmatmul.mubr.msk.bf16.vlgmr.msra.gmra.mrb[0].mxu1 %vm389_vm1, %v335_v9  ;;  %v308_v35 = vmax.f32 %v200_v16, 0.0 }
  0xe9   :  { %v195_v30 = vadd.f32 %v1086_v54, %v194_v29  ;;  %v306_v41 = vmax.f32 %v192_v18, 0.0 }
  0xea   :  { %v309_v36 = vmax.f32 %v203_v24, 0.0 }
  0xeb   :  { %v307_v42 = vmax.f32 %v195_v30, 0.0 }
  0xec   :  { %v337_v47 = vpack.c.bf16 %v309_v36, %v308_v35 }
  0xed   :  { %v336_v48 = vpack.c.bf16 %v307_v42, %v306_v41  ;;  %v759_v51 = vpop.f32.mrb[8].mxu0 }
  0xee   :  { %v216_v52 = vadd.f32 %v759_v51, %v1086_v54  ;;  %v207_v53 = vpop.f32.mrb[9].mxu0 }
  0xef   :  { %v208_v55 = vadd.f32 %v1086_v54, %v207_v53  ;;  %v760_v56 = vpop.f32.mrb[10].mxu0  ;;  %793 = vmatprep.mubr.msk.bf16.mxu1 %vm389_vm1, %v336_v48 }
  0xf0   :  { %v219_v57 = vadd.f32 %v760_v56, %v1086_v54  ;;  %v210_v58 = vpop.f32.mrb[11].mxu0  ;;  %794 = vmatmul.mubr.msk.bf16.gmra.mrb[4].mxu1 %vm389_vm1, %v337_v47  ;;  %v312_v60 = vmax.f32 %v216_v52, 0.0 }
  0xf1   :  { %v211_v59 = vadd.f32 %v1086_v54, %v210_v58  ;;  %v310_v62 = vmax.f32 %v208_v55, 0.0 }
  0xf2   :  { %v313_v61 = vmax.f32 %v219_v57, 0.0 }
  0xf3   :  { %v311_v63 = vmax.f32 %v211_v59, 0.0 }
  0xf4   :  { %v339_v0 = vpack.c.bf16 %v313_v61, %v312_v60 }
  0xf5   :  { %v338_v1 = vpack.c.bf16 %v311_v63, %v310_v62  ;;  %v763_v4 = vpop.f32.mrb[12].mxu0 }
  0xf6   :  { %v232_v9 = vadd.f32 %v763_v4, %v1086_v54  ;;  %v223_v10 = vpop.f32.mrb[13].mxu0 }
  0xf7   :  { %v224_v15 = vadd.f32 %v1086_v54, %v223_v10  ;;  %v764_v16 = vpop.f32.mrb[14].mxu0  ;;  %797 = vmatprep.mubr.msk.bf16.mxu1 %vm389_vm1, %v338_v1 }
  0xf8   :  { %v235_v17 = vadd.f32 %v764_v16, %v1086_v54  ;;  %v226_v18 = vpop.f32.mrb[15].mxu0  ;;  %798 = vmatmul.mubr.msk.bf16.gmra.mrb[8].mxu1 %vm389_vm1, %v339_v0  ;;  %v316_v24 = vmax.f32 %v232_v9, 0.0 }
  0xf9   :  { %v227_v23 = vadd.f32 %v1086_v54, %v226_v18  ;;  %v314_v30 = vmax.f32 %v224_v15, 0.0 }
  0xfa   :  { %v317_v29 = vmax.f32 %v235_v17, 0.0 }
  0xfb   :  { %v315_v35 = vmax.f32 %v227_v23, 0.0 }
  0xfc   :  { %v341_v36 = vpack.c.bf16 %v317_v29, %v316_v24 }
  0xfd   :  { %v340_v41 = vpack.c.bf16 %v315_v35, %v314_v30  ;;  %v767_v42 = vpop.f32.mrb[16].mxu0 }
  0xfe   :  { %v248_v47 = vadd.f32 %v767_v42, %v1086_v54  ;;  %v239_v48 = vpop.f32.mrb[17].mxu0 }
  0xff   :  { %v240_v51 = vadd.f32 %v1086_v54, %v239_v48  ;;  %v768_v52 = vpop.f32.mrb[18].mxu0  ;;  %801 = vmatprep.mubr.msk.bf16.mxu1 %vm389_vm1, %v340_v41 }
 0x100   :  { %v251_v53 = vadd.f32 %v768_v52, %v1086_v54  ;;  %v242_v55 = vpop.f32.mrb[19].mxu0  ;;  %802 = vmatmul.mubr.msk.bf16.gmra.mrb[12].mxu1 %vm389_vm1, %v341_v36  ;;  %v320_v57 = vmax.f32 %v248_v47, 0.0 }
 0x101   :  { %v243_v56 = vadd.f32 %v1086_v54, %v242_v55  ;;  %v318_v59 = vmax.f32 %v240_v51, 0.0 }
 0x102   :  { %v321_v58 = vmax.f32 %v251_v53, 0.0 }
 0x103   :  { %v319_v60 = vmax.f32 %v243_v56, 0.0 }
 0x104   :  { %v343_v61 = vpack.c.bf16 %v321_v58, %v320_v57 }
 0x105   :  { %v342_v62 = vpack.c.bf16 %v319_v60, %v318_v59  ;;  %v771_v63 = vpop.f32.mrb[20].mxu0 }
 0x106   :  { %v264_v0 = vadd.f32 %v771_v63, %v1086_v54  ;;  %v255_v1 = vpop.f32.mrb[21].mxu0 }
 0x107   :  { %v256_v4 = vadd.f32 %v1086_v54, %v255_v1  ;;  %v772_v9 = vpop.f32.mrb[22].mxu0  ;;  %805 = vmatprep.mubr.msk.bf16.mxu1 %vm389_vm1, %v342_v62 }
 0x108   :  { %v267_v10 = vadd.f32 %v772_v9, %v1086_v54  ;;  %v258_v15 = vpop.f32.mrb[23].mxu0  ;;  %806 = vmatmul.mubr.msk.bf16.gmra.mrb[16].mxu1 %vm389_vm1, %v343_v61  ;;  %v324_v17 = vmax.f32 %v264_v0, 0.0 }
 0x109   :  { %v259_v16 = vadd.f32 %v1086_v54, %v258_v15  ;;  %v322_v23 = vmax.f32 %v256_v4, 0.0 }
 0x10a   :  { %v325_v18 = vmax.f32 %v267_v10, 0.0 }
 0x10b   :  { %v323_v24 = vmax.f32 %v259_v16, 0.0 }
 0x10c   :  { %v345_v29 = vpack.c.bf16 %v325_v18, %v324_v17 }
 0x10d   :  { %v344_v30 = vpack.c.bf16 %v323_v24, %v322_v23  ;;  %v775_v35 = vpop.f32.mrb[24].mxu0  ;;  %v1139_v24 = vld [vmem:[%s1337_s4] ss:$0 sm:$0xff] }
 0x10e   :  { %v280_v36 = vadd.f32 %v775_v35, %v1086_v54  ;;  %v271_v41 = vpop.f32.mrb[25].mxu0 }
 0x10f   :  { %v272_v42 = vadd.f32 %v1086_v54, %v271_v41  ;;  %v776_v47 = vpop.f32.mrb[26].mxu0  ;;  %809 = vmatprep.mubr.msk.bf16.mxu1 %vm389_vm1, %v344_v30 }
 0x110   :  { %v283_v48 = vadd.f32 %v776_v47, %v1086_v54  ;;  %v274_v51 = vpop.f32.mrb[27].mxu0  ;;  %810 = vmatmul.mubr.msk.bf16.gmra.mrb[20].mxu1 %vm389_vm1, %v345_v29  ;;  %v328_v53 = vmax.f32 %v280_v36, 0.0 }
 0x111   :  { %v275_v52 = vadd.f32 %v1086_v54, %v274_v51  ;;  %v326_v56 = vmax.f32 %v272_v42, 0.0 }
 0x112   :  { %v329_v55 = vmax.f32 %v283_v48, 0.0 }
 0x113   :  { %v327_v57 = vmax.f32 %v275_v52, 0.0 }
 0x114   :  { %v347_v58 = vpack.c.bf16 %v329_v55, %v328_v53 }
 0x115   :  { %v346_v59 = vpack.c.bf16 %v327_v57, %v326_v56  ;;  %v779_v60 = vpop.f32.mrb[28].mxu0 }
 0x116   :  { %v296_v61 = vadd.f32 %v779_v60, %v1086_v54  ;;  %v287_v62 = vpop.f32.mrb[29].mxu0 }
 0x117   :  { %v288_v63 = vadd.f32 %v1086_v54, %v287_v62  ;;  %v780_v0 = vpop.f32.mrb[30].mxu0  ;;  %813 = vmatprep.mubr.msk.bf16.mxu1 %vm389_vm1, %v346_v59 }
 0x118   :  { %v299_v1 = vadd.f32 %v780_v0, %v1086_v54  ;;  %v290_v4 = vpop.f32.mrb[31].mxu0  ;;  %814 = vmatmul.mubr.msk.bf16.gmra.mrb[24].mxu1 %vm389_vm1, %v347_v58  ;;  %v332_v10 = vmax.f32 %v296_v61, 0.0 }
 0x119   :  { %v291_v9 = vadd.f32 %v1086_v54, %v290_v4  ;;  %v330_v16 = vmax.f32 %v288_v63, 0.0 }
 0x11a   :  { %v333_v15 = vmax.f32 %v299_v1, 0.0 }
 0x11b   :  { %v331_v17 = vmax.f32 %v291_v9, 0.0 }
 0x11c   :  { %v349_v18 = vpack.c.bf16 %v333_v15, %v332_v10 }
 0x11d   :  { %v348_v23 = vpack.c.bf16 %v331_v17, %v330_v16 }
 0x11f   :  { %817 = vmatprep.mubr.msk.bf16.mxu1 %vm389_vm1, %v348_v23 }
 0x120   :  { %818 = vmatmul.mubr.msk.bf16.gmra.mrb[28].mxu1 %vm389_vm1, %v349_v18 }
 0x1bb   :  { %v791_v29 = vpop.f32.mrb[0].mxu1 }
 0x1bc   :  { %v481_v30 = vadd.f32 %v791_v29, %v1139_v24  ;;  %v472_v35 = vpop.f32.mrb[1].mxu1 }
 0x1bd   :  { %v473_v54 = vadd.f32 %v1139_v24, %v472_v35  ;;  %v792_v36 = vpop.f32.mrb[2].mxu1 }
 0x1be   :  { %v601_v41 = vadd.f32 %v481_v30, %v878_v5  ;;  %v484_v42 = vadd.f32 %v792_v36, %v1139_v24  ;;  %v475_v47 = vpop.f32.mrb[3].mxu1 }
 0x1bf   :  { %v599_v48 = vadd.f32 %v473_v54, %v866_v2  ;;  %v476_v51 = vadd.f32 %v1139_v24, %v475_v47 }
 0x1c0   :  { %633 = vst.msk [vmem:[%s1338_s5 + $0x10] sm:$0xff] %vm92_vm0, %v601_v41  ;;  %v602_v52 = vadd.f32 %v484_v42, %v883_v6 }
 0x1c1   :  { %631 = vst.msk [vmem:[%s1338_s5] sm:$0xff] %vm92_vm0, %v599_v48  ;;  %v600_v5 = vadd.f32 %v476_v51, %v871_v3 }
 0x1c2   :  { %634 = vst.msk [vmem:[%s1338_s5 + $0x18] sm:$0xff] %vm92_vm0, %v602_v52 }
 0x1c3   :  { %632 = vst.msk [vmem:[%s1338_s5 + $0x8] sm:$0xff] %vm92_vm0, %v600_v5  ;;  %v795_v2 = vpop.f32.mrb[4].mxu1 }
 0x1c4   :  { %v497_v6 = vadd.f32 %v795_v2, %v1139_v24  ;;  %v488_v53 = vpop.f32.mrb[5].mxu1 }
 0x1c5   :  { %v489_v55 = vadd.f32 %v1139_v24, %v488_v53  ;;  %v796_v56 = vpop.f32.mrb[6].mxu1 }
 0x1c6   :  { %v605_v57 = vadd.f32 %v497_v6, %v905_v11  ;;  %v500_v3 = vadd.f32 %v796_v56, %v1139_v24  ;;  %v491_v58 = vpop.f32.mrb[7].mxu1 }
 0x1c7   :  { %v603_v59 = vadd.f32 %v489_v55, %v888_v7  ;;  %v492_v60 = vadd.f32 %v1139_v24, %v491_v58 }
 0x1c8   :  { %637 = vst.msk [vmem:[%s1338_s5 + $0x30] sm:$0xff] %vm92_vm0, %v605_v57  ;;  %v606_v61 = vadd.f32 %v500_v3, %v910_v12 }
 0x1c9   :  { %635 = vst.msk [vmem:[%s1338_s5 + $0x20] sm:$0xff] %vm92_vm0, %v603_v59  ;;  %v604_v11 = vadd.f32 %v492_v60, %v893_v8 }
 0x1ca   :  { %638 = vst.msk [vmem:[%s1338_s5 + $0x38] sm:$0xff] %vm92_vm0, %v606_v61 }
 0x1cb   :  { %636 = vst.msk [vmem:[%s1338_s5 + $0x28] sm:$0xff] %vm92_vm0, %v604_v11  ;;  %v799_v7 = vpop.f32.mrb[8].mxu1 }
 0x1cc   :  { %v513_v12 = vadd.f32 %v799_v7, %v1139_v24  ;;  %v504_v62 = vpop.f32.mrb[9].mxu1 }
 0x1cd   :  { %v505_v63 = vadd.f32 %v1139_v24, %v504_v62  ;;  %v800_v0 = vpop.f32.mrb[10].mxu1 }
 0x1ce   :  { %v609_v1 = vadd.f32 %v513_v12, %v937_v19  ;;  %v516_v8 = vadd.f32 %v800_v0, %v1139_v24  ;;  %v507_v4 = vpop.f32.mrb[11].mxu1 }
 0x1cf   :  { %v607_v9 = vadd.f32 %v505_v63, %v915_v13  ;;  %v508_v10 = vadd.f32 %v1139_v24, %v507_v4 }
 0x1d0   :  { %641 = vst.msk [vmem:[%s1338_s5 + $0x50] sm:$0xff] %vm92_vm0, %v609_v1  ;;  %v610_v15 = vadd.f32 %v516_v8, %v942_v20 }
 0x1d1   :  { %639 = vst.msk [vmem:[%s1338_s5 + $0x40] sm:$0xff] %vm92_vm0, %v607_v9  ;;  %v608_v19 = vadd.f32 %v508_v10, %v920_v14 }
 0x1d2   :  { %642 = vst.msk [vmem:[%s1338_s5 + $0x58] sm:$0xff] %vm92_vm0, %v610_v15 }
 0x1d3   :  { %640 = vst.msk [vmem:[%s1338_s5 + $0x48] sm:$0xff] %vm92_vm0, %v608_v19  ;;  %v803_v13 = vpop.f32.mrb[12].mxu1 }
 0x1d4   :  { %v529_v20 = vadd.f32 %v803_v13, %v1139_v24  ;;  %v520_v16 = vpop.f32.mrb[13].mxu1 }
 0x1d5   :  { %v521_v17 = vadd.f32 %v1139_v24, %v520_v16  ;;  %v804_v18 = vpop.f32.mrb[14].mxu1 }
 0x1d6   :  { %v613_v23 = vadd.f32 %v529_v20, %v963_v25  ;;  %v532_v14 = vadd.f32 %v804_v18, %v1139_v24  ;;  %v523_v29 = vpop.f32.mrb[15].mxu1 }
 0x1d7   :  { %v611_v30 = vadd.f32 %v521_v17, %v947_v21  ;;  %v524_v35 = vadd.f32 %v1139_v24, %v523_v29 }
 0x1d8   :  { %645 = vst.msk [vmem:[%s1338_s5 + $0x70] sm:$0xff] %vm92_vm0, %v613_v23  ;;  %v614_v54 = vadd.f32 %v532_v14, %v968_v26 }
 0x1d9   :  { %643 = vst.msk [vmem:[%s1338_s5 + $0x60] sm:$0xff] %vm92_vm0, %v611_v30  ;;  %v612_v25 = vadd.f32 %v524_v35, %v952_v22 }
 0x1da   :  { %646 = vst.msk [vmem:[%s1338_s5 + $0x78] sm:$0xff] %vm92_vm0, %v614_v54 }
 0x1db   :  { %644 = vst.msk [vmem:[%s1338_s5 + $0x68] sm:$0xff] %vm92_vm0, %v612_v25  ;;  %v807_v21 = vpop.f32.mrb[16].mxu1 }
 0x1dc   :  { %v545_v26 = vadd.f32 %v807_v21, %v1139_v24  ;;  %v536_v36 = vpop.f32.mrb[17].mxu1 }
 0x1dd   :  { %v537_v41 = vadd.f32 %v1139_v24, %v536_v36  ;;  %v808_v42 = vpop.f32.mrb[18].mxu1 }
 0x1de   :  { %v617_v47 = vadd.f32 %v545_v26, %v989_v31  ;;  %v548_v22 = vadd.f32 %v808_v42, %v1139_v24  ;;  %v539_v48 = vpop.f32.mrb[19].mxu1 }
 0x1df   :  { %v615_v51 = vadd.f32 %v537_v41, %v973_v27  ;;  %v540_v52 = vadd.f32 %v1139_v24, %v539_v48 }
 0x1e0   :  { %649 = vst.msk [vmem:[%s1338_s5 + $0x90] sm:$0xff] %vm92_vm0, %v617_v47  ;;  %v618_v5 = vadd.f32 %v548_v22, %v994_v32 }
 0x1e1   :  { %647 = vst.msk [vmem:[%s1338_s5 + $0x80] sm:$0xff] %vm92_vm0, %v615_v51  ;;  %v616_v31 = vadd.f32 %v540_v52, %v978_v28 }
 0x1e2   :  { %650 = vst.msk [vmem:[%s1338_s5 + $0x98] sm:$0xff] %vm92_vm0, %v618_v5 }
 0x1e3   :  { %648 = vst.msk [vmem:[%s1338_s5 + $0x88] sm:$0xff] %vm92_vm0, %v616_v31  ;;  %v811_v27 = vpop.f32.mrb[20].mxu1 }
 0x1e4   :  { %v561_v32 = vadd.f32 %v811_v27, %v1139_v24  ;;  %v552_v2 = vpop.f32.mrb[21].mxu1 }
 0x1e5   :  { %v553_v6 = vadd.f32 %v1139_v24, %v552_v2  ;;  %v812_v53 = vpop.f32.mrb[22].mxu1 }
 0x1e6   :  { %v621_v55 = vadd.f32 %v561_v32, %v1015_v37  ;;  %v564_v28 = vadd.f32 %v812_v53, %v1139_v24  ;;  %v555_v56 = vpop.f32.mrb[23].mxu1 }
 0x1e7   :  { %v619_v57 = vadd.f32 %v553_v6, %v999_v33  ;;  %v556_v3 = vadd.f32 %v1139_v24, %v555_v56 }
 0x1e8   :  { %653 = vst.msk [vmem:[%s1338_s5 + $0xb0] sm:$0xff] %vm92_vm0, %v621_v55  ;;  %v622_v58 = vadd.f32 %v564_v28, %v1020_v38 }
 0x1e9   :  { %651 = vst.msk [vmem:[%s1338_s5 + $0xa0] sm:$0xff] %vm92_vm0, %v619_v57  ;;  %v620_v37 = vadd.f32 %v556_v3, %v1004_v34 }
 0x1ea   :  { %654 = vst.msk [vmem:[%s1338_s5 + $0xb8] sm:$0xff] %vm92_vm0, %v622_v58 }
 0x1eb   :  { %652 = vst.msk [vmem:[%s1338_s5 + $0xa8] sm:$0xff] %vm92_vm0, %v620_v37  ;;  %v815_v33 = vpop.f32.mrb[24].mxu1 }
 0x1ec   :  { %v577_v38 = vadd.f32 %v815_v33, %v1139_v24  ;;  %v568_v59 = vpop.f32.mrb[25].mxu1 }
 0x1ed   :  { %v569_v60 = vadd.f32 %v1139_v24, %v568_v59  ;;  %v816_v61 = vpop.f32.mrb[26].mxu1 }
 0x1ee   :  { %v625_v11 = vadd.f32 %v577_v38, %v1041_v43  ;;  %v580_v34 = vadd.f32 %v816_v61, %v1139_v24  ;;  %v571_v7 = vpop.f32.mrb[27].mxu1 }
 0x1ef   :  { %v623_v12 = vadd.f32 %v569_v60, %v1025_v39  ;;  %v572_v62 = vadd.f32 %v1139_v24, %v571_v7 }
 0x1f0   :  { %657 = vst.msk [vmem:[%s1338_s5 + $0xd0] sm:$0xff] %vm92_vm0, %v625_v11  ;;  %v626_v63 = vadd.f32 %v580_v34, %v1046_v44 }
 0x1f1   :  { %655 = vst.msk [vmem:[%s1338_s5 + $0xc0] sm:$0xff] %vm92_vm0, %v623_v12  ;;  %v624_v43 = vadd.f32 %v572_v62, %v1030_v40 }
 0x1f2   :  { %658 = vst.msk [vmem:[%s1338_s5 + $0xd8] sm:$0xff] %vm92_vm0, %v626_v63 }
 0x1f3   :  { %656 = vst.msk [vmem:[%s1338_s5 + $0xc8] sm:$0xff] %vm92_vm0, %v624_v43  ;;  %v819_v39 = vpop.f32.mrb[28].mxu1 }
 0x1f4   :  { %v593_v44 = vadd.f32 %v819_v39, %v1139_v24  ;;  %v584_v0 = vpop.f32.mrb[29].mxu1 }
 0x1f5   :  { %v585_v1 = vadd.f32 %v1139_v24, %v584_v0  ;;  %v820_v8 = vpop.f32.mrb[30].mxu1 }
 0x1f6   :  { %v629_v4 = vadd.f32 %v593_v44, %v1067_v49  ;;  %v596_v40 = vadd.f32 %v820_v8, %v1139_v24  ;;  %v587_v9 = vpop.f32.mrb[31].mxu1 }
 0x1f7   :  { %v627_v10 = vadd.f32 %v585_v1, %v1051_v45  ;;  %v588_v15 = vadd.f32 %v1139_v24, %v587_v9 }
 0x1f8   :  { %661 = vst.msk [vmem:[%s1338_s5 + $0xf0] sm:$0xff] %vm92_vm0, %v629_v4  ;;  %v630_v19 = vadd.f32 %v596_v40, %v1072_v50 }
 0x1f9   :  { %659 = vst.msk [vmem:[%s1338_s5 + $0xe0] sm:$0xff] %vm92_vm0, %v627_v10  ;;  %v628_v49 = vadd.f32 %v588_v15, %v1056_v46 }
 0x1fa   :  { %662 = vst.msk [vmem:[%s1338_s5 + $0xf8] sm:$0xff] %vm92_vm0, %v630_v19 }
 0x1fb   :  { %660 = vst.msk [vmem:[%s1338_s5 + $0xe8] sm:$0xff] %vm92_vm0, %v628_v49 }

</bundles_post_ra>
